<compile_context>
chip_gen: v7x
topology: tpu7x:2x2x1
jax: 0.10.0
libtpu: 0.0.40
codegen_flags: <defaults>
</compile_context>

<pallas_src>
import functools

import jax
import jax.numpy as jnp
from jax.experimental import pallas as pl
from jax.experimental.pallas import tpu as pltpu

# ------------------------- "Config" (synthetic, deterministic) -------------------
INPUT_SIZE = 32
HIDDEN_SIZES = [64, 64, 32]
OUTPUT_SIZE = 8
BN_EPS = 1e-5
DROPOUT_P = 0.5
LANE = 128  # TPU lane width; every feature dim is zero-padded to this.


# ------------------------------- Pallas kernel ------------------------------------
def _mlp_kernel(x_ref, w_ref, v_ref, mask_ref, o_ref, *, training: bool):
    x = x_ref[...]                                   # (B, 128) f32

    w1 = w_ref[0]                                    # (128, 128) each, zero-padded
    w2 = w_ref[1]
    w3 = w_ref[2]
    w4 = w_ref[3]

    b1 = v_ref[0:1, :]                               # (1, 128) rows of the vector slab
    b2 = v_ref[1:2, :]
    g2 = v_ref[2:3, :]
    beta2 = v_ref[3:4, :]
    b3 = v_ref[4:5, :]
    g3 = v_ref[5:6, :]
    beta3 = v_ref[6:7, :]
    b4 = v_ref[7:8, :]

    # ---- fc1 + relu ----
    l1 = jnp.maximum(
        jnp.dot(x, w1, preferred_element_type=jnp.float32) + b1, 0.0)

    # ---- fc2 + BatchNorm1d (batch stats, biased var) + relu ----
    h2 = jnp.dot(l1, w2, preferred_element_type=jnp.float32) + b2
    m2 = jnp.mean(h2, axis=0, keepdims=True)
    var2 = jnp.mean(h2 * h2, axis=0, keepdims=True) - m2 * m2
    s2 = g2 * jax.lax.rsqrt(var2 + BN_EPS)           # folded scale
    l2 = jnp.maximum(h2 * s2 + (beta2 - m2 * s2), 0.0)

    # ---- fc3 + BatchNorm1d + relu ----
    h3 = jnp.dot(l2, w3, preferred_element_type=jnp.float32) + b3
    m3 = jnp.mean(h3, axis=0, keepdims=True)
    var3 = jnp.mean(h3 * h3, axis=0, keepdims=True) - m3 * m3
    s3 = g3 * jax.lax.rsqrt(var3 + BN_EPS)
    l3 = jnp.maximum(h3 * s3 + (beta3 - m3 * s3), 0.0)

    # ---- dropout (p = 0.5), only when training ----
    if training:
        keep = (mask_ref[...] >= jnp.float32(DROPOUT_P)).astype(jnp.float32)
        l3 = l3 * (keep * jnp.float32(1.0 / (1.0 - DROPOUT_P)))

    # ---- fc4 (lane-dense (B,128) store; real outputs live in lanes [0:8]) ----
    o_ref[...] = jnp.dot(l3, w4, preferred_element_type=jnp.float32) + b4


# ------------------------------- Python wrapper ------------------------------------
def _full_spec(shape):
    nd = len(shape)
    return pl.BlockSpec(shape, lambda *_, _nd=nd: (0,) * _nd)


def nn_model_forward(x, params, *, training: bool = True, rng=None):
    """x: (B, INPUT_SIZE) float32. Returns (B, OUTPUT_SIZE) float32."""
    B = x.shape[0]

    # Lane-pad the input to (B, 128).
    x_pad = jnp.zeros((B, LANE), jnp.float32).at[:, :INPUT_SIZE].set(x)

    w_pack = params["w_pack"]     # (4, 128, 128)
    v_pack = params["v_pack"]     # (8, 128)

    if training:
        if rng is None:
            rng = jax.random.PRNGKey(0)
        mask = jax.random.uniform(rng, (B, LANE), jnp.float32)
    else:
        mask = jnp.zeros((B, LANE), jnp.float32)   # unused in eval path

    kernel = functools.partial(_mlp_kernel, training=training)

    out_pad = pl.pallas_call(
        kernel,
        out_shape=jax.ShapeDtypeStruct((B, LANE), jnp.float32),
        grid=(1,),
        in_specs=[
            _full_spec((B, LANE)),
            _full_spec((4, LANE, LANE)),
            _full_spec((8, LANE)),
            _full_spec((B, LANE)),
        ],
        out_specs=_full_spec((B, LANE)),
        compiler_params=pltpu.CompilerParams(
            dimension_semantics=("arbitrary",),
        ),
    )(x_pad, w_pack, v_pack, mask)

    return out_pad[:, :OUTPUT_SIZE]


# --------------------------- deterministic parameter init --------------------------
def init_params(key):
    ks = jax.random.split(key, 8)
    dims = [INPUT_SIZE] + HIDDEN_SIZES + [OUTPUT_SIZE]   # [32, 64, 64, 32, 8]

    def linear(kw, kb, fan_in, fan_out):
        bound = float(fan_in) ** -0.5
        # stored as (in, out) so the kernel computes x @ W (PyTorch keeps (out, in)).
        w = jax.random.uniform(kw, (fan_in, fan_out), jnp.float32, -bound, bound)
        b = jax.random.uniform(kb, (fan_out,), jnp.float32, -bound, bound)
        return w, b

    w1, b1 = linear(ks[0], ks[1], dims[0], dims[1])
    w2, b2 = linear(ks[2], ks[3], dims[1], dims[2])
    w3, b3 = linear(ks[4], ks[5], dims[2], dims[3])
    w4, b4 = linear(ks[6], ks[7], dims[3], dims[4])

    g2 = jnp.ones((dims[2],), jnp.float32)
    beta2 = jnp.zeros((dims[2],), jnp.float32)
    g3 = jnp.ones((dims[3],), jnp.float32)
    beta3 = jnp.zeros((dims[3],), jnp.float32)

    def pad_w(w):
        return jnp.zeros((LANE, LANE), jnp.float32).at[: w.shape[0], : w.shape[1]].set(w)

    def pad_v(v):
        return jnp.zeros((LANE,), jnp.float32).at[: v.shape[0]].set(v)

    # One lane-dense weight slab and one (8,128) vector slab (zero padding keeps the
    # padded lanes exactly 0 through every layer, including the BatchNorms).
    w_pack = jnp.stack([pad_w(w1), pad_w(w2), pad_w(w3), pad_w(w4)], axis=0)
    v_pack = jnp.stack(
        [pad_v(b1), pad_v(b2), pad_v(g2), pad_v(beta2),
         pad_v(b3), pad_v(g3), pad_v(beta3), pad_v(b4)],
        axis=0,
    )
    return dict(w_pack=w_pack, v_pack=v_pack)


if __name__ == "__main__":
    key = jax.random.PRNGKey(0)
    kx, kp, kd = jax.random.split(key, 3)

    B = 8
    x = jax.random.normal(kx, (B, INPUT_SIZE), jnp.float32)
    params = init_params(kp)

    # training_mode=True: dropout active (host-seeded uniforms), BN uses batch stats
    # (matches the PyTorch module in its default .training=True state).
    out = nn_model_forward(x, params, training=True, rng=kd)
    jax.block_until_ready(out)
    assert out.shape == (B, OUTPUT_SIZE)

    # training_mode=False: dropout is identity; BN still uses batch statistics,
    # matching NNModel(training_mode=False) in the module's default training state.
    # TODO(synk): eval()-mode BatchNorm (running_mean/running_var) path not implemented.
    out_eval = nn_model_forward(x, params, training=False)
    jax.block_until_ready(out_eval)
    assert out_eval.shape == (B, OUTPUT_SIZE)

    print("KERNEL_OK")
</pallas_src>

<mosaic_0001>
module attributes {stable_mosaic.version = 11 : i64} {
  func.func @_mlp_kernel(%arg0: i32, %arg1: memref<8x128xf32, #tpu.memory_space<vmem>>, %arg2: memref<4x128x128xf32, #tpu.memory_space<vmem>>, %arg3: memref<8x128xf32, #tpu.memory_space<vmem>>, %arg4: memref<8x128xf32, #tpu.memory_space<vmem>>, %arg5: memref<8x128xf32, #tpu.memory_space<vmem>>) attributes {dimension_semantics = [#tpu.dimension_semantics<arbitrary>], iteration_bounds = array<i64: 1>, scalar_prefetch = 0 : i64, scratch_operands = 0 : i64, tpu.core_type = #tpu.core_type<tc>, window_params = [{pipeline_mode = #tpu.pipeline_mode<synchronous>, transform_indices = @transform_0, window_bounds = array<i64: 8, 128>}, {pipeline_mode = #tpu.pipeline_mode<synchronous>, transform_indices = @transform_1, window_bounds = array<i64: 4, 128, 128>}, {pipeline_mode = #tpu.pipeline_mode<synchronous>, transform_indices = @transform_2, window_bounds = array<i64: 8, 128>}, {pipeline_mode = #tpu.pipeline_mode<synchronous>, transform_indices = @transform_3, window_bounds = array<i64: 8, 128>}, {pipeline_mode = #tpu.pipeline_mode<synchronous>, transform_indices = @transform_4, window_bounds = array<i64: 8, 128>}]} {
    %c0 = arith.constant 0 : index
    %c0_0 = arith.constant 0 : index
    %0 = vector.load %arg1[%c0, %c0_0] : memref<8x128xf32, #tpu.memory_space<vmem>>, vector<8x128xf32>
    %c0_1 = arith.constant 0 : index
    %c0_2 = arith.constant 0 : index
    %c0_3 = arith.constant 0 : index
    %1 = vector.load %arg2[%c0_1, %c0_2, %c0_3] : memref<4x128x128xf32, #tpu.memory_space<vmem>>, vector<1x128x128xf32>
    %2 = vector.shape_cast %1 : vector<1x128x128xf32> to vector<128x128xf32>
    %c1 = arith.constant 1 : index
    %c0_4 = arith.constant 0 : index
    %c0_5 = arith.constant 0 : index
    %3 = vector.load %arg2[%c1, %c0_4, %c0_5] : memref<4x128x128xf32, #tpu.memory_space<vmem>>, vector<1x128x128xf32>
    %4 = vector.shape_cast %3 : vector<1x128x128xf32> to vector<128x128xf32>
    %c2 = arith.constant 2 : index
    %c0_6 = arith.constant 0 : index
    %c0_7 = arith.constant 0 : index
    %5 = vector.load %arg2[%c2, %c0_6, %c0_7] : memref<4x128x128xf32, #tpu.memory_space<vmem>>, vector<1x128x128xf32>
    %6 = vector.shape_cast %5 : vector<1x128x128xf32> to vector<128x128xf32>
    %c3 = arith.constant 3 : index
    %c0_8 = arith.constant 0 : index
    %c0_9 = arith.constant 0 : index
    %7 = vector.load %arg2[%c3, %c0_8, %c0_9] : memref<4x128x128xf32, #tpu.memory_space<vmem>>, vector<1x128x128xf32>
    %8 = vector.shape_cast %7 : vector<1x128x128xf32> to vector<128x128xf32>
    %c0_10 = arith.constant 0 : index
    %c0_11 = arith.constant 0 : index
    %9 = vector.load %arg3[%c0_10, %c0_11] : memref<8x128xf32, #tpu.memory_space<vmem>>, vector<1x128xf32>
    %c1_12 = arith.constant 1 : index
    %c0_13 = arith.constant 0 : index
    %10 = vector.load %arg3[%c1_12, %c0_13] : memref<8x128xf32, #tpu.memory_space<vmem>>, vector<1x128xf32>
    %c2_14 = arith.constant 2 : index
    %c0_15 = arith.constant 0 : index
    %11 = vector.load %arg3[%c2_14, %c0_15] : memref<8x128xf32, #tpu.memory_space<vmem>>, vector<1x128xf32>
    %c3_16 = arith.constant 3 : index
    %c0_17 = arith.constant 0 : index
    %12 = vector.load %arg3[%c3_16, %c0_17] : memref<8x128xf32, #tpu.memory_space<vmem>>, vector<1x128xf32>
    %c4 = arith.constant 4 : index
    %c0_18 = arith.constant 0 : index
    %13 = vector.load %arg3[%c4, %c0_18] : memref<8x128xf32, #tpu.memory_space<vmem>>, vector<1x128xf32>
    %c5 = arith.constant 5 : index
    %c0_19 = arith.constant 0 : index
    %14 = vector.load %arg3[%c5, %c0_19] : memref<8x128xf32, #tpu.memory_space<vmem>>, vector<1x128xf32>
    %c6 = arith.constant 6 : index
    %c0_20 = arith.constant 0 : index
    %15 = vector.load %arg3[%c6, %c0_20] : memref<8x128xf32, #tpu.memory_space<vmem>>, vector<1x128xf32>
    %c7 = arith.constant 7 : index
    %c0_21 = arith.constant 0 : index
    %16 = vector.load %arg3[%c7, %c0_21] : memref<8x128xf32, #tpu.memory_space<vmem>>, vector<1x128xf32>
    %cst = arith.constant dense<0.000000e+00> : vector<8x128xf32>
    %17 = tpu.matmul %0, %2, %cst {dimension_numbers = #tpu.dot_dimension_numbers<[1], [0], [0], [1], [0, 0, 1, 1], [], []>} : vector<8x128xf32>, vector<128x128xf32>, vector<8x128xf32> -> vector<8x128xf32>
    %18 = vector.broadcast %9 : vector<1x128xf32> to vector<8x128xf32>
    %19 = arith.addf %17, %18 : vector<8x128xf32>
    %cst_22 = arith.constant 0.000000e+00 : f32
    %20 = vector.broadcast %cst_22 : f32 to vector<8x128xf32>
    %21 = arith.maximumf %19, %20 : vector<8x128xf32>
    %cst_23 = arith.constant dense<0.000000e+00> : vector<8x128xf32>
    %22 = tpu.matmul %21, %4, %cst_23 {dimension_numbers = #tpu.dot_dimension_numbers<[1], [0], [0], [1], [0, 0, 1, 1], [], []>} : vector<8x128xf32>, vector<128x128xf32>, vector<8x128xf32> -> vector<8x128xf32>
    %23 = vector.broadcast %10 : vector<1x128xf32> to vector<8x128xf32>
    %24 = arith.addf %22, %23 : vector<8x128xf32>
    %cst_24 = arith.constant dense<0.000000e+00> : vector<128xf32>
    %25 = vector.multi_reduction <add>, %24, %cst_24 [0] : vector<8x128xf32> to vector<128xf32>
    %26 = vector.shape_cast %25 : vector<128xf32> to vector<1x128xf32>
    %cst_25 = arith.constant 8.000000e+00 : f32
    %27 = vector.broadcast %cst_25 : f32 to vector<1x128xf32>
    %28 = arith.divf %26, %27 : vector<1x128xf32>
    %29 = arith.mulf %24, %24 : vector<8x128xf32>
    %cst_26 = arith.constant dense<0.000000e+00> : vector<128xf32>
    %30 = vector.multi_reduction <add>, %29, %cst_26 [0] : vector<8x128xf32> to vector<128xf32>
    %31 = vector.shape_cast %30 : vector<128xf32> to vector<1x128xf32>
    %cst_27 = arith.constant 8.000000e+00 : f32
    %32 = vector.broadcast %cst_27 : f32 to vector<1x128xf32>
    %33 = arith.divf %31, %32 : vector<1x128xf32>
    %34 = arith.mulf %28, %28 : vector<1x128xf32>
    %35 = arith.subf %33, %34 : vector<1x128xf32>
    %cst_28 = arith.constant 9.99999974E-6 : f32
    %36 = vector.broadcast %cst_28 : f32 to vector<1x128xf32>
    %37 = arith.addf %35, %36 : vector<1x128xf32>
    %38 = math.rsqrt %37 : vector<1x128xf32>
    %39 = arith.mulf %11, %38 : vector<1x128xf32>
    %40 = vector.broadcast %39 : vector<1x128xf32> to vector<8x128xf32>
    %41 = arith.mulf %24, %40 : vector<8x128xf32>
    %42 = arith.mulf %28, %39 : vector<1x128xf32>
    %43 = arith.subf %12, %42 : vector<1x128xf32>
    %44 = vector.broadcast %43 : vector<1x128xf32> to vector<8x128xf32>
    %45 = arith.addf %41, %44 : vector<8x128xf32>
    %cst_29 = arith.constant 0.000000e+00 : f32
    %46 = vector.broadcast %cst_29 : f32 to vector<8x128xf32>
    %47 = arith.maximumf %45, %46 : vector<8x128xf32>
    %cst_30 = arith.constant dense<0.000000e+00> : vector<8x128xf32>
    %48 = tpu.matmul %47, %6, %cst_30 {dimension_numbers = #tpu.dot_dimension_numbers<[1], [0], [0], [1], [0, 0, 1, 1], [], []>} : vector<8x128xf32>, vector<128x128xf32>, vector<8x128xf32> -> vector<8x128xf32>
    %49 = vector.broadcast %13 : vector<1x128xf32> to vector<8x128xf32>
    %50 = arith.addf %48, %49 : vector<8x128xf32>
    %cst_31 = arith.constant dense<0.000000e+00> : vector<128xf32>
    %51 = vector.multi_reduction <add>, %50, %cst_31 [0] : vector<8x128xf32> to vector<128xf32>
    %52 = vector.shape_cast %51 : vector<128xf32> to vector<1x128xf32>
    %cst_32 = arith.constant 8.000000e+00 : f32
    %53 = vector.broadcast %cst_32 : f32 to vector<1x128xf32>
    %54 = arith.divf %52, %53 : vector<1x128xf32>
    %55 = arith.mulf %50, %50 : vector<8x128xf32>
    %cst_33 = arith.constant dense<0.000000e+00> : vector<128xf32>
    %56 = vector.multi_reduction <add>, %55, %cst_33 [0] : vector<8x128xf32> to vector<128xf32>
    %57 = vector.shape_cast %56 : vector<128xf32> to vector<1x128xf32>
    %cst_34 = arith.constant 8.000000e+00 : f32
    %58 = vector.broadcast %cst_34 : f32 to vector<1x128xf32>
    %59 = arith.divf %57, %58 : vector<1x128xf32>
    %60 = arith.mulf %54, %54 : vector<1x128xf32>
    %61 = arith.subf %59, %60 : vector<1x128xf32>
    %cst_35 = arith.constant 9.99999974E-6 : f32
    %62 = vector.broadcast %cst_35 : f32 to vector<1x128xf32>
    %63 = arith.addf %61, %62 : vector<1x128xf32>
    %64 = math.rsqrt %63 : vector<1x128xf32>
    %65 = arith.mulf %14, %64 : vector<1x128xf32>
    %66 = vector.broadcast %65 : vector<1x128xf32> to vector<8x128xf32>
    %67 = arith.mulf %50, %66 : vector<8x128xf32>
    %68 = arith.mulf %54, %65 : vector<1x128xf32>
    %69 = arith.subf %15, %68 : vector<1x128xf32>
    %70 = vector.broadcast %69 : vector<1x128xf32> to vector<8x128xf32>
    %71 = arith.addf %67, %70 : vector<8x128xf32>
    %cst_36 = arith.constant 0.000000e+00 : f32
    %72 = vector.broadcast %cst_36 : f32 to vector<8x128xf32>
    %73 = arith.maximumf %71, %72 : vector<8x128xf32>
    %c0_37 = arith.constant 0 : index
    %c0_38 = arith.constant 0 : index
    %74 = vector.load %arg4[%c0_37, %c0_38] : memref<8x128xf32, #tpu.memory_space<vmem>>, vector<8x128xf32>
    %cst_39 = arith.constant 5.000000e-01 : f32
    %75 = vector.broadcast %cst_39 : f32 to vector<8x128xf32>
    %76 = arith.cmpf oge, %74, %75 : vector<8x128xf32>
    %77 = arith.extui %76 : vector<8x128xi1> to vector<8x128xi32>
    %78 = arith.sitofp %77 : vector<8x128xi32> to vector<8x128xf32>
    %cst_40 = arith.constant 2.000000e+00 : f32
    %79 = vector.broadcast %cst_40 : f32 to vector<8x128xf32>
    %80 = arith.mulf %78, %79 : vector<8x128xf32>
    %81 = arith.mulf %73, %80 : vector<8x128xf32>
    %cst_41 = arith.constant dense<0.000000e+00> : vector<8x128xf32>
    %82 = tpu.matmul %81, %8, %cst_41 {dimension_numbers = #tpu.dot_dimension_numbers<[1], [0], [0], [1], [0, 0, 1, 1], [], []>} : vector<8x128xf32>, vector<128x128xf32>, vector<8x128xf32> -> vector<8x128xf32>
    %83 = vector.broadcast %16 : vector<1x128xf32> to vector<8x128xf32>
    %84 = arith.addf %82, %83 : vector<8x128xf32>
    %c0_42 = arith.constant 0 : index
    %c0_43 = arith.constant 0 : index
    %85 = vector.load %arg5[%c0_42, %c0_43] : memref<8x128xf32, #tpu.memory_space<vmem>>, vector<8x128xf32>
    tpu.vector_store %arg5[%c0_42, %c0_43], %84 {strides = array<i32>} : memref<8x128xf32, #tpu.memory_space<vmem>>, vector<8x128xf32>,
    return
  }
  func.func @transform_0(%arg0: i32) -> (i32, i32) {
    %c0_i32 = arith.constant 0 : i32
    %c0_i32_0 = arith.constant 0 : i32
    %c0_i32_1 = arith.constant 0 : i32
    return %c0_i32, %c0_i32_0 : i32, i32
  }
  func.func @transform_1(%arg0: i32) -> (i32, i32, i32) {
    %c0_i32 = arith.constant 0 : i32
    %c0_i32_0 = arith.constant 0 : i32
    %c0_i32_1 = arith.constant 0 : i32
    %c0_i32_2 = arith.constant 0 : i32
    return %c0_i32, %c0_i32_0, %c0_i32_1 : i32, i32, i32
  }
  func.func @transform_2(%arg0: i32) -> (i32, i32) {
    %c0_i32 = arith.constant 0 : i32
    %c0_i32_0 = arith.constant 0 : i32
    %c0_i32_1 = arith.constant 0 : i32
    return %c0_i32, %c0_i32_0 : i32, i32
  }
  func.func @transform_3(%arg0: i32) -> (i32, i32) {
    %c0_i32 = arith.constant 0 : i32
    %c0_i32_0 = arith.constant 0 : i32
    %c0_i32_1 = arith.constant 0 : i32
    return %c0_i32, %c0_i32_0 : i32, i32
  }
  func.func @transform_4(%arg0: i32) -> (i32, i32) {
    %c0_i32 = arith.constant 0 : i32
    %c0_i32_0 = arith.constant 0 : i32
    %c0_i32_1 = arith.constant 0 : i32
    return %c0_i32, %c0_i32_0 : i32, i32
  }
}

</mosaic_0001>

<bundles_post_ra>
// kernel: tpu_custom_call.1
= control target key start
LH: loop header
LB: loop body
LE: loop exit
PB: predicated region body
PF: predicated region fallthrough
CT: control target
= control target key end

     0   :  { %9 = vsyncpa [#allocation3], 0  ;;  %s1066_s0 = inlined_call_operand.hbm [shape: f32[8,128], index: 0, kind: input, shape index: {}]   ;;  %s1067_s1 = inlined_call_operand.hbm [shape: f32[4,128,128], index: 1, kind: input, shape index: {}]   ;;  %s1068_s2 = inlined_call_operand.hbm [shape: f32[8,128], index: 2, kind: input, shape index: {}]   ;;  %s1069_s3 = inlined_call_operand.vmem [shape: f32[8,128], index: 3, kind: input, shape index: {}]   ;;  %s1070_s4 = inlined_call_operand.hbm [shape: f32[8,128], index: 4, kind: output, shape index: {}]  }
   0x1   :  { %10 = vsyncpa [#allocation6], 0 }
   0x2   :  { %11 = vsyncpa [#allocation4], 0  ;;  %s934_s15 = smov [#allocation5]   ;;  %s840_s19 = scalar_lea.hbm %s1067_s1, 8192 }
   0x3   :  { %s27_s16 = sshll.u32 %s934_s15, 4  ;;  %p841_p0 = scmp.ne.s32.totalorder %s1067_s1, %s840_s19  ;;  %s28_s16 = int_to_ptr.vmem [resolvable:$true] %s27_s16 }
   0x4   :  { %p844_p1 = scmp.lt.u32.totalorder %s840_s19, %s1067_s1 }
   0x6   :  { %p846_p2 = pnand %p844_p1, %p841_p0 }
   0x8   :  { %849 = shalt.err (!%p846_p2)
}
   0x9   :  { %s850_s24 = scalar_lea.vmem %s28_s16, 8192  ;;  %p855_p4 = scmp.lt.s32.totalorder %s28_s16, %s28_s16 }
   0xa   :  { %p851_p3 = scmp.ne.s32.totalorder %s28_s16, %s850_s24  ;;  %p856_p5 = scmp.lt.s32.totalorder %s850_s24, %s850_s24 }
   0xc   :  { %p857_p6 = por %p856_p5, %p855_p4 }
   0xe   :  { %p858_p7 = pnand %p857_p6, %p851_p3 }
  0x10   :  { %861 = shalt.err (!%p858_p7)
}
  0x11   :  { %s935_s25 = smov 128   ;;  %s936_s26 = smov 8  }
  0x12   :  { %33 = dma.hbm_to_vmem [thread:$0]  %s1067_s1, 8192, %s28_s16, [#allocation6], %s935_s25, %s935_s25, %s936_s26  }
  0x13   :  { %s937_s29 = smov [#allocation2]   ;;  %s938_s5 = smov [#allocation7]  }
  0x14   :  { %s18_s30 = sshll.u32 %s937_s29, 4  ;;  %s40_s6 = sshll.u32 %s938_s5, 4  ;;  %s19_s30 = int_to_ptr.vmem [resolvable:$true] %s18_s30  ;;  %s41_s6 = int_to_ptr.vmem [resolvable:$true] %s40_s6 }
  0x15   :  { %s862_s9 = scalar_lea.hbm %s1066_s0, 128 }
  0x16   :  { %p863_p8 = scmp.ne.s32.totalorder %s1066_s0, %s862_s9  ;;  %p866_p9 = scmp.lt.u32.totalorder %s862_s9, %s1066_s0 }
  0x18   :  { %p868_p10 = pnand %p866_p9, %p863_p8 }
  0x1a   :  { %871 = shalt.err (!%p868_p10)
}
  0x1b   :  { %s872_s1 = scalar_lea.vmem %s19_s30, 128  ;;  %p877_p12 = scmp.lt.s32.totalorder %s19_s30, %s19_s30 }
  0x1c   :  { %p873_p11 = scmp.ne.s32.totalorder %s19_s30, %s872_s1  ;;  %p878_p13 = scmp.lt.s32.totalorder %s872_s1, %s872_s1 }
  0x1e   :  { %p879_p0 = por %p878_p13, %p877_p12 }
  0x20   :  { %p880_p1 = pnand %p879_p0, %p873_p11 }
  0x22   :  { %883 = shalt.err (!%p880_p1)
}
  0x23   :  { %21 = dma.hbm_to_vmem [thread:$0]  %s1066_s0, 128, %s19_s30, [#allocation3]  }
  0x24   :  { %s884_s18 = scalar_lea.hbm %s1068_s2, 128 }
  0x25   :  { %p885_p2 = scmp.ne.s32.totalorder %s1068_s2, %s884_s18  ;;  %p888_p3 = scmp.lt.u32.totalorder %s884_s18, %s1068_s2 }
  0x27   :  { %p890_p4 = pnand %p888_p3, %p885_p2 }
  0x29   :  { %893 = shalt.err (!%p890_p4)
}
  0x2a   :  { %s894_s23 = scalar_lea.vmem %s41_s6, 128  ;;  %p899_p6 = scmp.lt.s32.totalorder %s41_s6, %s41_s6 }
  0x2b   :  { %p895_p5 = scmp.ne.s32.totalorder %s41_s6, %s894_s23  ;;  %p900_p7 = scmp.lt.s32.totalorder %s894_s23, %s894_s23 }
  0x2d   :  { %p901_p8 = por %p900_p7, %p899_p6 }
  0x2f   :  { %p902_p9 = pnand %p901_p8, %p895_p5 }
  0x31   :  { %905 = shalt.err (!%p902_p9)
}
  0x32   :  { %43 = dma.hbm_to_vmem [thread:$0]  %s1068_s2, 128, %s41_s6, [#allocation6]  }
  0x33   :  { %928 = dma.done.wait [#allocation3], 128  }
  0x34   :  { %929 = vsyncadd [#allocation3], 4294967168 }
  0x35   :  { %930 = dma.done.wait [#allocation6], 8320  }
  0x36   :  { %931 = vsyncadd [#allocation6], 4294958976  ;;  %v939_v0 = vmov 0.0|0.0   ;;  %vm940_vm0 = vmmov 0   ;;  %v941_v1 = vmov 0.0   ;;  %v56_v2 = vld [vmem:[#allocation5] sm:$0xff] }
  0x37   :  { %731 = vmatprep.subr.bf16.mxu0 %v939_v0  ;;  %623 = vmatprep.mubr.msk.f32.mxu0 %vm940_vm0, %v941_v1  ;;  %v57_v3 = vld [vmem:[#allocation5 + $0x8] sm:$0xff]  ;;  %v58_v4 = vld [vmem:[#allocation5 + $0x10] sm:$0xff]  ;;  %v59_v6 = vld [vmem:[#allocation5 + $0x18] sm:$0xff]  ;;  %s942_s26 = smov [#allocation8]  }
  0x38   :  { %755 = vmatprep.subr.bf16.mxu1 %v939_v0  ;;  %658 = vmatprep.mubr.msk.f32.mxu1 %vm940_vm0, %v941_v1  ;;  %v732_v5 = vpack.c.bf16 %v57_v3, %v56_v2  ;;  %v735_v7 = vpack.c.bf16 %v59_v6, %v58_v4  ;;  %v60_v8 = vld [vmem:[#allocation5 + $0x20] sm:$0xff]  ;;  %v61_v9 = vld [vmem:[#allocation5 + $0x28] sm:$0xff]  ;;  %v75_v12 = vld [vmem:[#allocation5 + $0x90] sm:$0xff] }
  0x39   :  { %v73_v10 = vld [vmem:[#allocation5 + $0x80] sm:$0xff]  ;;  %v74_v11 = vld [vmem:[#allocation5 + $0x88] sm:$0xff]  ;;  %v76_v13 = vld [vmem:[#allocation5 + $0x98] sm:$0xff]  ;;  %v738_v14 = vpack.c.bf16 %v61_v9, %v60_v8 }
  0x3a   :  { %733 = vmatpush3.bf16.msra.mxu0 %v732_v5  ;;  %v756_v15 = vpack.c.bf16 %v74_v11, %v73_v10  ;;  %v62_v16 = vld [vmem:[#allocation5 + $0x30] sm:$0xff]  ;;  %v63_v17 = vld [vmem:[#allocation5 + $0x38] sm:$0xff]  ;;  %v759_v18 = vpack.c.bf16 %v76_v13, %v75_v12  ;;  %v77_v19 = vld [vmem:[#allocation5 + $0xa0] sm:$0xff] }
  0x3b   :  { %734 = vmatprep.subr.bf16.mxu0 %v939_v0  ;;  %v78_v20 = vld [vmem:[#allocation5 + $0xa8] sm:$0xff]  ;;  %v741_v21 = vpack.c.bf16 %v63_v17, %v62_v16  ;;  %v64_v22 = vld [vmem:[#allocation5 + $0x40] sm:$0xff]  ;;  %v79_v25 = vld [vmem:[#allocation5 + $0xb0] sm:$0xff] }
  0x3c   :  { %757 = vmatpush3.bf16.msra.mxu1 %v756_v15  ;;  %v65_v23 = vld [vmem:[#allocation5 + $0x48] sm:$0xff]  ;;  %v762_v24 = vpack.c.bf16 %v78_v20, %v77_v19  ;;  %v80_v26 = vld [vmem:[#allocation5 + $0xb8] sm:$0xff]  ;;  %v66_v28 = vld [vmem:[#allocation5 + $0x50] sm:$0xff] }
  0x3d   :  { %758 = vmatprep.subr.bf16.mxu1 %v939_v0  ;;  %v744_v27 = vpack.c.bf16 %v65_v23, %v64_v22  ;;  %v67_v29 = vld [vmem:[#allocation5 + $0x58] sm:$0xff]  ;;  %v765_v30 = vpack.c.bf16 %v80_v26, %v79_v25  ;;  %v81_v31 = vld [vmem:[#allocation5 + $0xc0] sm:$0xff]  ;;  %v82_v32 = vld [vmem:[#allocation5 + $0xc8] sm:$0xff] }
  0x3e   :  { %736 = vmatpush3.bf16.msra.mxu0 %v735_v7  ;;  %v747_v33 = vpack.c.bf16 %v67_v29, %v66_v28  ;;  %v68_v34 = vld [vmem:[#allocation5 + $0x60] sm:$0xff]  ;;  %v69_v35 = vld [vmem:[#allocation5 + $0x68] sm:$0xff]  ;;  %v768_v36 = vpack.c.bf16 %v82_v32, %v81_v31  ;;  %v83_v37 = vld [vmem:[#allocation5 + $0xd0] sm:$0xff] }
  0x3f   :  { %737 = vmatprep.subr.bf16.mxu0 %v939_v0  ;;  %v84_v38 = vld [vmem:[#allocation5 + $0xd8] sm:$0xff]  ;;  %v750_v39 = vpack.c.bf16 %v69_v35, %v68_v34  ;;  %v70_v40 = vld [vmem:[#allocation5 + $0x70] sm:$0xff]  ;;  %v85_v43 = vld [vmem:[#allocation5 + $0xe0] sm:$0xff] }
  0x40   :  { %760 = vmatpush3.bf16.msra.mxu1 %v759_v18  ;;  %v71_v41 = vld [vmem:[#allocation5 + $0x78] sm:$0xff]  ;;  %v771_v42 = vpack.c.bf16 %v84_v38, %v83_v37  ;;  %v86_v44 = vld [vmem:[#allocation5 + $0xe8] sm:$0xff]  ;;  %v87_v48 = vld [vmem:[#allocation5 + $0xf0] sm:$0xff] }
  0x41   :  { %761 = vmatprep.subr.bf16.mxu1 %v939_v0  ;;  %v753_v45 = vpack.c.bf16 %v71_v41, %v70_v40  ;;  %v774_v46 = vpack.c.bf16 %v86_v44, %v85_v43  ;;  %v55_v47 = vld [vmem:[#allocation2] sm:$0xff]  ;;  %v518_v51 = vld [vmem:[#allocation7] ss:$0 sm:$0xff]  ;;  %v91_v57 = vld [vmem:[#allocation5 + $0x108] sm:$0xff]  ;;  %v301_v40 = vlaneseq }
  0x42   :  { %739 = vmatpush3.bf16.msra.mxu0 %v738_v14  ;;  %v88_v49 = vld [vmem:[#allocation5 + $0xf8] sm:$0xff]  ;;  %v90_v56 = vld [vmem:[#allocation5 + $0x100] sm:$0xff]  ;;  %v92_v59 = vld [vmem:[#allocation5 + $0x110] sm:$0xff] }
  0x43   :  { %740 = vmatprep.subr.bf16.mxu0 %v939_v0  ;;  %v777_v50 = vpack.c.bf16 %v88_v49, %v87_v48  ;;  %v780_v58 = vpack.c.bf16 %v91_v57, %v90_v56  ;;  %v93_v60 = vld [vmem:[#allocation5 + $0x118] sm:$0xff]  ;;  %v94_v62 = vld [vmem:[#allocation5 + $0x120] sm:$0xff]  ;;  %v95_v63 = vld [vmem:[#allocation5 + $0x128] sm:$0xff]  ;;  %v302_v41 = vshrl.u32 %v301_v40, 7 }
  0x44   :  { %763 = vmatpush3.bf16.msra.mxu1 %v762_v24  ;;  %v783_v61 = vpack.c.bf16 %v93_v60, %v92_v59  ;;  %v786_v2 = vpack.c.bf16 %v95_v63, %v94_v62  ;;  %v96_v3 = vld [vmem:[#allocation5 + $0x130] sm:$0xff]  ;;  %v97_v4 = vld [vmem:[#allocation5 + $0x138] sm:$0xff]  ;;  %v98_v6 = vld [vmem:[#allocation5 + $0x140] sm:$0xff] }
  0x45   :  { %764 = vmatprep.subr.bf16.mxu1 %v939_v0  ;;  %v789_v5 = vpack.c.bf16 %v97_v4, %v96_v3  ;;  %v99_v7 = vld [vmem:[#allocation5 + $0x148] sm:$0xff]  ;;  %v100_v9 = vld [vmem:[#allocation5 + $0x150] sm:$0xff]  ;;  %v101_v10 = vld [vmem:[#allocation5 + $0x158] sm:$0xff]  ;;  %v1037_v43 = vsub.s32 0, %v302_v41 }
  0x46   :  { %742 = vmatpush3.bf16.msra.mxu0 %v741_v21  ;;  %v792_v8 = vpack.c.bf16 %v99_v7, %v98_v6  ;;  %v795_v11 = vpack.c.bf16 %v101_v10, %v100_v9  ;;  %v102_v12 = vld [vmem:[#allocation5 + $0x160] sm:$0xff]  ;;  %v103_v13 = vld [vmem:[#allocation5 + $0x168] sm:$0xff]  ;;  %v104_v15 = vld [vmem:[#allocation5 + $0x170] sm:$0xff] }
  0x47   :  { %743 = vmatprep.subr.bf16.mxu0 %v939_v0  ;;  %v798_v14 = vpack.c.bf16 %v103_v13, %v102_v12  ;;  %v105_v16 = vld [vmem:[#allocation5 + $0x178] sm:$0xff]  ;;  %v519_v18 = vld [vmem:[#allocation7 + $0x1] ss:$0 sm:$0xff]  ;;  %v109_v57 = vld [vmem:[#allocation5 + $0x190] sm:$0xff] }
  0x48   :  { %766 = vmatpush3.bf16.msra.mxu1 %v765_v30  ;;  %v801_v17 = vpack.c.bf16 %v105_v16, %v104_v15  ;;  %v111_v60 = vld [vmem:[#allocation5 + $0x1a0] sm:$0xff]  ;;  %v113_v63 = vld [vmem:[#allocation5 + $0x1b0] sm:$0xff] }
  0x49   :  { %767 = vmatprep.subr.bf16.mxu1 %v939_v0  ;;  %v115_v4 = vld [vmem:[#allocation5 + $0x1c0] sm:$0xff]  ;;  %v117_v7 = vld [vmem:[#allocation5 + $0x1d0] sm:$0xff] }
  0x4a   :  { %745 = vmatpush3.bf16.msra.mxu0 %v744_v27  ;;  %v119_v10 = vld [vmem:[#allocation5 + $0x1e0] sm:$0xff]  ;;  %v121_v12 = vld [vmem:[#allocation5 + $0x1f0] sm:$0xff] }
  0x4b   :  { %746 = vmatprep.subr.bf16.mxu0 %v939_v0  ;;  %v520_v16 = vld [vmem:[#allocation7 + $0x4] ss:$0 sm:$0xff]  ;;  %v129_v41 = vld [vmem:[#allocation7 + $0x6] sm:$0x1] }
  0x4c   :  { %769 = vmatpush3.bf16.msra.mxu1 %v768_v36 }
  0x4d   :  { %770 = vmatprep.subr.bf16.mxu1 %v939_v0 }
  0x4e   :  { %748 = vmatpush3.bf16.msra.mxu0 %v747_v33 }
  0x4f   :  { %749 = vmatprep.subr.bf16.mxu0 %v939_v0 }
  0x50   :  { %772 = vmatpush3.bf16.msra.mxu1 %v771_v42  ;;  %v125_v42 = vld [vmem:[#allocation7 + $0x2] sm:$0x1] }
  0x51   :  { %773 = vmatprep.subr.bf16.mxu1 %v939_v0 }
  0x52   :  { %751 = vmatpush3.bf16.msra.mxu0 %v750_v39 }
  0x53   :  { %752 = vmatprep.subr.bf16.mxu0 %v939_v0 }
  0x54   :  { %775 = vmatpush3.bf16.msra.mxu1 %v774_v46  ;;  %v126_v46 = vld [vmem:[#allocation7 + $0x3] sm:$0x1] }
  0x55   :  { %776 = vmatprep.subr.bf16.mxu1 %v939_v0 }
  0x56   :  { %754 = vmatpush3.bf16.msra.mxu0 %v753_v45 }
  0x57   :  { %779 = vmatprep.subr.bf16.mxu0 %v939_v0 }
  0x58   :  { %778 = vmatpush3.bf16.msra.mxu1 %v777_v50 }
  0x59   :  { %624 = vmatmul.mubr.f32.vlgmr.msra.gmra.mrb[0].mxu0 %v55_v47  ;;  %803 = vmatprep.subr.bf16.mxu1 %v939_v0 }
  0x5a   :  { %693 = vmatprep.mubr.msk.f32.mxu0 %vm940_vm0, %v941_v1  ;;  %781 = vmatpush3.bf16.msra.mxu0 %v780_v58  ;;  %v110_v58 = vld [vmem:[#allocation5 + $0x198] sm:$0xff] }
  0x5b   :  { %782 = vmatprep.subr.bf16.mxu0 %v939_v0  ;;  %v807_v59 = vpack.c.bf16 %v110_v58, %v109_v57 }
  0x5e   :  { %784 = vmatpush3.bf16.msra.mxu0 %v783_v61  ;;  %v112_v61 = vld [vmem:[#allocation5 + $0x1a8] sm:$0xff] }
  0x5f   :  { %785 = vmatprep.subr.bf16.mxu0 %v939_v0  ;;  %v810_v62 = vpack.c.bf16 %v112_v61, %v111_v60 }
  0x62   :  { %787 = vmatpush3.bf16.msra.mxu0 %v786_v2  ;;  %v114_v2 = vld [vmem:[#allocation5 + $0x1b8] sm:$0xff] }
  0x63   :  { %788 = vmatprep.subr.bf16.mxu0 %v939_v0  ;;  %v813_v3 = vpack.c.bf16 %v114_v2, %v113_v63 }
  0x66   :  { %790 = vmatpush3.bf16.msra.mxu0 %v789_v5  ;;  %v116_v5 = vld [vmem:[#allocation5 + $0x1c8] sm:$0xff] }
  0x67   :  { %791 = vmatprep.subr.bf16.mxu0 %v939_v0  ;;  %v816_v6 = vpack.c.bf16 %v116_v5, %v115_v4 }
  0x6a   :  { %793 = vmatpush3.bf16.msra.mxu0 %v792_v8  ;;  %v118_v8 = vld [vmem:[#allocation5 + $0x1d8] sm:$0xff] }
  0x6b   :  { %794 = vmatprep.subr.bf16.mxu0 %v939_v0  ;;  %v819_v9 = vpack.c.bf16 %v118_v8, %v117_v7 }
  0x6e   :  { %796 = vmatpush3.bf16.msra.mxu0 %v795_v11  ;;  %v120_v11 = vld [vmem:[#allocation5 + $0x1e8] sm:$0xff] }
  0x6f   :  { %797 = vmatprep.subr.bf16.mxu0 %v939_v0  ;;  %v822_v13 = vpack.c.bf16 %v120_v11, %v119_v10 }
  0x72   :  { %799 = vmatpush3.bf16.msra.mxu0 %v798_v14  ;;  %v122_v14 = vld [vmem:[#allocation5 + $0x1f8] sm:$0xff] }
  0x73   :  { %800 = vmatprep.subr.bf16.mxu0 %v939_v0  ;;  %v825_v15 = vpack.c.bf16 %v122_v14, %v121_v12 }
  0x76   :  { %802 = vmatpush3.bf16.msra.mxu0 %v801_v17 }
 0x12c   :  { %v201_v52 = vpop.f32.mrb[0].mxu0 }
 0x12d   :  { %v202_v53 = vadd.f32 %v518_v51, %v201_v52  ;;  %v625_v54 = vpop.f32.mrb[1].mxu0 }
 0x12e   :  { %v107_v54 = vld [vmem:[#allocation5 + $0x180] sm:$0xff] }
 0x12f   :  { %v205_v55 = vmax.f32 %v202_v53, 0.0 }
 0x131   :  { %659 = vmatmul.mubr.f32.vlgmr.msra.gmra.mrb[0].mxu1 %v205_v55  ;;  %v108_v55 = vld [vmem:[#allocation5 + $0x188] sm:$0xff] }
 0x132   :  { %728 = vmatprep.mubr.msk.f32.mxu1 %vm940_vm0, %v941_v1  ;;  %v804_v56 = vpack.c.bf16 %v108_v55, %v107_v54 }
 0x134   :  { %805 = vmatpush3.bf16.msra.mxu1 %v804_v56 }
 0x135   :  { %806 = vmatprep.subr.bf16.mxu1 %v939_v0 }
 0x138   :  { %808 = vmatpush3.bf16.msra.mxu1 %v807_v59 }
 0x139   :  { %809 = vmatprep.subr.bf16.mxu1 %v939_v0 }
 0x13c   :  { %811 = vmatpush3.bf16.msra.mxu1 %v810_v62 }
 0x13d   :  { %812 = vmatprep.subr.bf16.mxu1 %v939_v0 }
 0x140   :  { %814 = vmatpush3.bf16.msra.mxu1 %v813_v3 }
 0x141   :  { %815 = vmatprep.subr.bf16.mxu1 %v939_v0 }
 0x144   :  { %817 = vmatpush3.bf16.msra.mxu1 %v816_v6 }
 0x145   :  { %818 = vmatprep.subr.bf16.mxu1 %v939_v0 }
 0x148   :  { %820 = vmatpush3.bf16.msra.mxu1 %v819_v9 }
 0x149   :  { %821 = vmatprep.subr.bf16.mxu1 %v939_v0 }
 0x14c   :  { %823 = vmatpush3.bf16.msra.mxu1 %v822_v13 }
 0x14d   :  { %824 = vmatprep.subr.bf16.mxu1 %v939_v0 }
 0x150   :  { %826 = vmatpush3.bf16.msra.mxu1 %v825_v15 }
 0x204   :  { %v276_v19 = vpop.f32.mrb[0].mxu1 }
 0x205   :  { %v277_v20 = vadd.f32 %v519_v18, %v276_v19  ;;  %v660_v21 = vpop.f32.mrb[1].mxu1 }
 0x207   :  { %v280_v22 = vrot.slane %v277_v20, 4  ;;  %v288_v23 = vmul.f32 %v277_v20, %v277_v20 }
 0x209   :  { %v281_v24 = vadd.f32 %v280_v22, %v277_v20  ;;  %v289_v25 = vrot.slane %v288_v23, 4 }
 0x20b   :  { %v282_v26 = vrot.slane %v281_v24, 2  ;;  %v290_v27 = vadd.f32 %v289_v25, %v288_v23 }
 0x20d   :  { %v283_v28 = vadd.f32 %v282_v26, %v281_v24  ;;  %v291_v29 = vrot.slane %v290_v27, 2 }
 0x20f   :  { %v284_v30 = vrot.slane %v283_v28, 1  ;;  %v292_v31 = vadd.f32 %v291_v29, %v290_v27 }
 0x211   :  { %v285_v32 = vadd.f32 %v284_v30, %v283_v28  ;;  %v293_v33 = vrot.slane %v292_v31, 1 }
 0x213   :  { %v287_v34 = vmul.f32 0.125, %v285_v32  ;;  %v294_v35 = vadd.f32 %v293_v33, %v292_v31 }
 0x215   :  { %v295_v36 = vmul.f32 0.125, %v294_v35  ;;  %v296_v37 = vmul.f32 %v287_v34, %v287_v34 }
 0x217   :  { %v297_v38 = vsub.f32 %v295_v36, %v296_v37  ;;  %v128_v37 = vld [vmem:[#allocation7 + $0x5] sm:$0x1] }
 0x219   :  { %v298_v39 = vadd.f32 1e-05, %v297_v38 }
 0x21b   :  { %836 = vrsqrt.f32 %v298_v39  ;;  %v421_v39 = vld [vmem:[%s1069_s3] sm:$0xff]  ;;  %s508_s3 = sshll.u32 %s942_s26, 4  ;;  %s509_s3 = int_to_ptr.vmem [resolvable:$true] %s508_s3 }
 0x21c   :  { %vm422_vm1 = vcmp.ge.f32.partialorder %v421_v39, 0.5  ;;  %s906_s27 = scalar_lea.vmem %s509_s3, 128  ;;  %p911_p11 = scmp.lt.s32.totalorder %s509_s3, %s509_s3 }
 0x21d   :  { %p907_p10 = scmp.ne.s32.totalorder %s509_s3, %s906_s27  ;;  %p912_p12 = scmp.lt.s32.totalorder %s906_s27, %s906_s27 }
 0x21f   :  { %p913_p13 = por %p912_p12, %p911_p11 }
 0x221   :  { %p914_p0 = pnand %p913_p13, %p907_p10 }
 0x225   :  { %v837_v44 = vpop.eup %836 }
 0x226   :  { %v300_v45 = vmul.f32 %v837_v44, %v125_v42 }
 0x228   :  { %v304_v47 = vrot.slane %v300_v45, %v1037_v43  ;;  %v306_v48 = vmul.f32 %v300_v45, %v287_v34 }
 0x22a   :  { %v307_v49 = vsub.f32 %v126_v46, %v306_v48  ;;  %v305_v50 = vmul.f32 %v304_v47, %v277_v20  ;;  %v521_v46 = vsel %vm422_vm1, 1.0, %v941_v1 }
 0x22c   :  { %v311_v51 = vrot.slane %v307_v49, %v1037_v43 }
 0x22e   :  { %v312_v52 = vadd.f32 %v311_v51, %v305_v50  ;;  %v425_v50 = vmul.f32 2.0, %v521_v46 }
 0x230   :  { %v313_v53 = vmax.f32 %v312_v52, 0.0 }
 0x232   :  { %694 = vmatmul.mubr.f32.vlgmr.msra.gmra.mrb[2].mxu0 %v313_v53  ;;  %v522_v53 = vld [vmem:[#allocation7 + $0x7] ss:$0 sm:$0xff] }
 0x305   :  { %v384_v17 = vpop.f32.mrb[2].mxu0 }
 0x306   :  { %v385_v18 = vadd.f32 %v520_v16, %v384_v17  ;;  %v695_v19 = vpop.f32.mrb[3].mxu0 }
 0x308   :  { %v388_v20 = vrot.slane %v385_v18, 4  ;;  %v395_v21 = vmul.f32 %v385_v18, %v385_v18 }
 0x30a   :  { %v389_v22 = vadd.f32 %v388_v20, %v385_v18  ;;  %v396_v23 = vrot.slane %v395_v21, 4 }
 0x30c   :  { %v390_v24 = vrot.slane %v389_v22, 2  ;;  %v397_v25 = vadd.f32 %v396_v23, %v395_v21 }
 0x30e   :  { %v391_v26 = vadd.f32 %v390_v24, %v389_v22  ;;  %v398_v27 = vrot.slane %v397_v25, 2 }
 0x310   :  { %v392_v28 = vrot.slane %v391_v26, 1  ;;  %v399_v29 = vadd.f32 %v398_v27, %v397_v25 }
 0x312   :  { %v393_v30 = vadd.f32 %v392_v28, %v391_v26  ;;  %v400_v31 = vrot.slane %v399_v29, 1 }
 0x314   :  { %v394_v32 = vmul.f32 0.125, %v393_v30  ;;  %v401_v33 = vadd.f32 %v400_v31, %v399_v29 }
 0x316   :  { %v402_v0 = vmul.f32 0.125, %v401_v33  ;;  %v403_v34 = vmul.f32 %v394_v32, %v394_v32 }
 0x318   :  { %v404_v35 = vsub.f32 %v402_v0, %v403_v34 }
 0x31a   :  { %v405_v36 = vadd.f32 1e-05, %v404_v35 }
 0x31c   :  { %838 = vrsqrt.f32 %v405_v36 }
 0x326   :  { %v839_v38 = vpop.eup %838 }
 0x327   :  { %v407_v40 = vmul.f32 %v839_v38, %v128_v37 }
 0x329   :  { %v411_v42 = vrot.slane %v407_v40, %v1037_v43  ;;  %v413_v44 = vmul.f32 %v407_v40, %v394_v32 }
 0x32b   :  { %v414_v45 = vsub.f32 %v129_v41, %v413_v44  ;;  %v412_v47 = vmul.f32 %v411_v42, %v385_v18 }
 0x32d   :  { %v418_v48 = vrot.slane %v414_v45, %v1037_v43 }
 0x32f   :  { %v419_v49 = vadd.f32 %v418_v48, %v412_v47 }
 0x331   :  { %v420_v51 = vmax.f32 %v419_v49, 0.0 }
 0x333   :  { %v426_v52 = vmul.f32 %v425_v50, %v420_v51 }
 0x335   :  { %729 = vmatmul.mubr.f32.vlgmr.msra.gmra.mrb[2].mxu1 %v426_v52 }
 0x408   :  { %v497_v54 = vpop.f32.mrb[2].mxu1 }
 0x409   :  { %v498_v55 = vadd.f32 %v522_v53, %v497_v54  ;;  %v730_v56 = vpop.f32.mrb[3].mxu1 }
 0x40b   :  { %501 = vst [vmem:[#allocation8] sm:$0xff] %v498_v55 }
 0x40c   :  { %917 = shalt.err (!%p914_p0)
}
 0x40d   :  { %s918_s30 = scalar_lea.hbm %s1070_s4, 128 }
 0x40e   :  { %p919_p1 = scmp.ne.s32.totalorder %s1070_s4, %s918_s30  ;;  %p922_p2 = scmp.lt.u32.totalorder %s918_s30, %s1070_s4 }
 0x410   :  { %p924_p3 = pnand %p922_p2, %p919_p1 }
 0x412   :  { %927 = shalt.err (!%p924_p3)
}
 0x413   :  { %511 = dma.vmem_to_hbm [thread:$0]  %s509_s3, 128, %s1070_s4, [#allocation4]  }
 0x414   :  { %932 = dma.done.wait [#allocation4], 128  }
 0x415   :  { %933 = vsyncadd [#allocation4], 4294967168 }
 0x416   :  { %515 = vsyncpa [#allocation3], 1 }
 0x417   :  { %516 = vsyncpa [#allocation6], 1 }
 0x418   :  { %517 = vsyncpa [#allocation4], 1 }

</bundles_post_ra>
